<compile_context>
chip_gen: v6e
topology: v6e:2x2x1
jax: 0.10.0
libtpu: 0.0.40
codegen_flags: <defaults>
</compile_context>

<pallas_src>
import jax
import jax.numpy as jnp
from jax.experimental import pallas as pl
from jax.experimental.pallas import tpu as pltpu


def _round_up(x, m):
    return (x + m - 1) // m * m


def _cdiv(a, b):
    return (a + b - 1) // b


def policy_kernel(x_ref, w1_ref, b1_ref, w2_ref, b2_ref, w3_ref, b3_ref, o_ref):
    # fc1 + ReLU   (bf16 operands, f32 accumulation)
    x = x_ref[...].astype(jnp.bfloat16)
    h1 = jnp.dot(x, w1_ref[...], preferred_element_type=jnp.float32)
    h1 = jnp.maximum(h1 + b1_ref[...], 0.0)
    # fc2 + ReLU
    h2 = jnp.dot(h1.astype(jnp.bfloat16), w2_ref[...],
                 preferred_element_type=jnp.float32)
    h2 = jnp.maximum(h2 + b2_ref[...], 0.0)
    # fc3 + sigmoid -> narrow (out_dim-wide) store; masked vst is fine (HBM-bound).
    logits = jnp.dot(h2.astype(jnp.bfloat16), w3_ref[...],
                     preferred_element_type=jnp.float32) + b3_ref[...]
    o_ref[...] = jax.nn.sigmoid(logits).astype(o_ref.dtype)


def prepare_params(params):
    """One-time parameter prep: bf16 weights (MXU-native, half the weight DMA),
    f32 row-vector biases. Call once, reuse the result across kernel calls."""
    return {
        "w1": params["w1"].astype(jnp.bfloat16),
        "b1": params["b1"].astype(jnp.float32).reshape(1, -1),
        "w2": params["w2"].astype(jnp.bfloat16),
        "b2": params["b2"].astype(jnp.float32).reshape(1, -1),
        "w3": params["w3"].astype(jnp.bfloat16),
        "b3": params["b3"].astype(jnp.float32).reshape(1, -1),
    }


def policy_network(x, params, *, tile_b=8192):
    """x: [B, input_size] (f32 or bf16). params: raw f32 dict or prepare_params() output.

    Returns sigmoid(fc3(relu(fc2(relu(fc1(x)))))) with shape [B, output_size] (f32).
    """
    # Accept raw params for convenience, but prefer pre-prepared ones (no per-call
    # cast/reshape ops on a microsecond-scale kernel).
    if params["w1"].dtype != jnp.bfloat16:
        params = prepare_params(params)
    w1, b1 = params["w1"], params["b1"]
    w2, b2 = params["w2"], params["b2"]
    w3, b3 = params["w3"], params["b3"]

    B, in_dim = x.shape
    hid = w1.shape[1]
    hid4 = w2.shape[1]
    out_dim = w3.shape[1]

    # ---- Batch tiling -------------------------------------------------------
    B8 = _round_up(B, 8)
    tile_b = max(8, _round_up(int(tile_b), 8))
    n_steps = _cdiv(B8, tile_b)
    # v7x megacore: prefer >=2 grid steps (so 'parallel' shards across both TCs)
    # whenever halving the tile still leaves enough work to amortize step overhead.
    if n_steps < 2 and B8 >= 2 * 1024:
        n_steps = 2
    tb = _round_up(_cdiv(B8, n_steps), 8)
    Bp = n_steps * tb
    if Bp != B:
        x = jnp.pad(x, ((0, Bp - B), (0, 0)))
    grid = (n_steps,)

    # ---- Scoped-VMEM budget -------------------------------------------------
    # Rough per-step footprint: double-buffered x/out tiles + f32/bf16 temporaries
    # + resident bf16 weights. Raise the scoped limit only if we outgrow the
    # conservative default (16 MiB on v5e), and never above 75% of the chip's VMEM
    # (v7x only has 64 MiB per TC).
    xb = x.dtype.itemsize
    est_vmem = (2 * tb * in_dim * xb                       # x tiles (double-buffered)
                + 2 * tb * out_dim * 4                     # out tiles (double-buffered)
                + 2 * tb * (hid + hid4 + out_dim) * 4      # activations + bf16 copies
                + 4 * (in_dim * hid + hid * hid4 + hid4 * out_dim) * 2
                + 4 * (hid + hid4 + out_dim) * 4)
    vmem_limit = None
    if est_vmem > 10 * 1024 * 1024:
        try:
            info = pltpu.get_tpu_info()
            vmem_cap = int(getattr(info, "vmem_capacity_bytes", 64 * 1024 * 1024))
        except Exception:
            vmem_cap = 64 * 1024 * 1024    # most conservative (v7x per-TC)
        vmem_limit = min(_round_up(2 * est_vmem, 1 << 20), int(0.75 * vmem_cap))

    # ---- Cost estimate (bandwidth-dominated custom call) --------------------
    flops = 2 * Bp * (in_dim * hid + hid * hid4 + hid4 * out_dim)
    bytes_accessed = (Bp * in_dim * xb + Bp * out_dim * 4
                      + (in_dim * hid + hid * hid4 + hid4 * out_dim) * 2
                      + (hid + hid4 + out_dim) * 4)
    cost = pl.CostEstimate(flops=int(flops),
                           transcendentals=int(Bp * out_dim),
                           bytes_accessed=int(bytes_accessed))

    rep = lambda shape: pl.BlockSpec(shape, lambda i: (0,) * len(shape))

    out = pl.pallas_call(
        policy_kernel,
        out_shape=jax.ShapeDtypeStruct((Bp, out_dim), jnp.float32),
        grid_spec=pltpu.PrefetchScalarGridSpec(
            num_scalar_prefetch=0,
            grid=grid,
            in_specs=[
                pl.BlockSpec((tb, in_dim), lambda i: (i, 0)),  # x tile (streamed)
                rep((in_dim, hid)),     # w1 (resident; constant index_map)
                rep((1, hid)),          # b1
                rep((hid, hid4)),       # w2
                rep((1, hid4)),         # b2
                rep((hid4, out_dim)),   # w3
                rep((1, out_dim)),      # b3
            ],
            out_specs=pl.BlockSpec((tb, out_dim), lambda i: (i, 0)),
        ),
        compiler_params=pltpu.CompilerParams(
            dimension_semantics=("parallel",),   # shards across TCs on v7x
            vmem_limit_bytes=vmem_limit,
        ),
        cost_estimate=cost,
    )(x, w1, b1, w2, b2, w3, b3)

    return out[:B]


def init_params(key, input_size, hidden_size, output_size):
    """Deterministic init mimicking nn.Linear default (uniform +-1/sqrt(fan_in))."""
    hid4 = hidden_size // 4
    ks = jax.random.split(key, 6)

    def lin(kw, kb, fan_in, fan_out):
        bound = 1.0 / jnp.sqrt(float(fan_in))
        w = jax.random.uniform(kw, (fan_in, fan_out), jnp.float32, -bound, bound)
        b = jax.random.uniform(kb, (1, fan_out), jnp.float32, -bound, bound)
        return w, b

    w1, b1 = lin(ks[0], ks[1], input_size, hidden_size)
    w2, b2 = lin(ks[2], ks[3], hidden_size, hid4)
    w3, b3 = lin(ks[4], ks[5], hid4, output_size)
    return {"w1": w1, "b1": b1, "w2": w2, "b2": b2, "w3": w3, "b3": b3}


def reference(x, p):
    h1 = jnp.maximum(x @ p["w1"] + p["b1"], 0.0)
    h2 = jnp.maximum(h1 @ p["w2"] + p["b2"], 0.0)
    return jax.nn.sigmoid(h2 @ p["w3"] + p["b3"])


if __name__ == "__main__":
    key = jax.random.PRNGKey(0)
    k_x, k_p = jax.random.split(key)

    batch = 200          # ragged on purpose: exercises the batch-padding path
    input_size = 32      # last-FC-features x num-assets
    hidden_size = 32
    output_size = 8      # asset weights

    x = jax.random.normal(k_x, (batch, input_size), jnp.float32)
    params = init_params(k_p, input_size, hidden_size, output_size)

    # One-time param prep (bf16 weights), then the call itself is a single DMA-bound
    # pallas_call over the batch.
    prepped = prepare_params(params)
    out = policy_network(x, prepped)
    out = jax.block_until_ready(out)

    ref = reference(x, params)
    assert out.shape == (batch, output_size)
    # bf16 matmul operands vs. f32 reference -> loosened tolerance.
    assert jnp.allclose(out, ref, atol=2e-2, rtol=2e-2), "mismatch vs pure-JAX reference"

    print("KERNEL_OK")
</pallas_src>

<mosaic_0001>
module attributes {stable_mosaic.version = 11 : i64} {
  func.func @policy_kernel(%arg0: i32, %arg1: memref<200x32xf32, #tpu.memory_space<vmem>>, %arg2: memref<32x32xbf16, #tpu.memory_space<vmem>>, %arg3: memref<1x32xf32, #tpu.memory_space<vmem>>, %arg4: memref<32x8xbf16, #tpu.memory_space<vmem>>, %arg5: memref<1x8xf32, #tpu.memory_space<vmem>>, %arg6: memref<8x8xbf16, #tpu.memory_space<vmem>>, %arg7: memref<1x8xf32, #tpu.memory_space<vmem>>, %arg8: memref<200x8xf32, #tpu.memory_space<vmem>>) attributes {dimension_semantics = [#tpu.dimension_semantics<parallel>], iteration_bounds = array<i64: 1>, scalar_prefetch = 0 : i64, scratch_operands = 0 : i64, tpu.core_type = #tpu.core_type<tc>, window_params = [{transform_indices = @transform_0, window_bounds = array<i64: 200, 32>}, {pipeline_mode = #tpu.pipeline_mode<synchronous>, transform_indices = @transform_1, window_bounds = array<i64: 32, 32>}, {pipeline_mode = #tpu.pipeline_mode<synchronous>, transform_indices = @transform_2, window_bounds = array<i64: 1, 32>}, {pipeline_mode = #tpu.pipeline_mode<synchronous>, transform_indices = @transform_3, window_bounds = array<i64: 32, 8>}, {pipeline_mode = #tpu.pipeline_mode<synchronous>, transform_indices = @transform_4, window_bounds = array<i64: 1, 8>}, {pipeline_mode = #tpu.pipeline_mode<synchronous>, transform_indices = @transform_5, window_bounds = array<i64: 8, 8>}, {pipeline_mode = #tpu.pipeline_mode<synchronous>, transform_indices = @transform_6, window_bounds = array<i64: 1, 8>}, {transform_indices = @transform_7, window_bounds = array<i64: 200, 8>}]} {
    %c0 = arith.constant 0 : index
    %c0_0 = arith.constant 0 : index
    %0 = vector.load %arg1[%c0, %c0_0] : memref<200x32xf32, #tpu.memory_space<vmem>>, vector<200x32xf32>
    %1 = arith.truncf %0 : vector<200x32xf32> to vector<200x32xbf16>
    %c0_1 = arith.constant 0 : index
    %c0_2 = arith.constant 0 : index
    %2 = vector.load %arg2[%c0_1, %c0_2] : memref<32x32xbf16, #tpu.memory_space<vmem>>, vector<32x32xbf16>
    %cst = arith.constant dense<0.000000e+00> : vector<200x32xf32>
    %3 = tpu.matmul %1, %2, %cst {dimension_numbers = #tpu.dot_dimension_numbers<[1], [0], [0], [1], [0, 0, 1, 1], [], []>} : vector<200x32xbf16>, vector<32x32xbf16>, vector<200x32xf32> -> vector<200x32xf32>
    %c0_3 = arith.constant 0 : index
    %c0_4 = arith.constant 0 : index
    %4 = vector.load %arg3[%c0_3, %c0_4] : memref<1x32xf32, #tpu.memory_space<vmem>>, vector<1x32xf32>
    %5 = vector.broadcast %4 : vector<1x32xf32> to vector<200x32xf32>
    %6 = arith.addf %3, %5 : vector<200x32xf32>
    %cst_5 = arith.constant 0.000000e+00 : f32
    %7 = vector.broadcast %cst_5 : f32 to vector<200x32xf32>
    %8 = arith.maximumf %6, %7 : vector<200x32xf32>
    %9 = arith.truncf %8 : vector<200x32xf32> to vector<200x32xbf16>
    %c0_6 = arith.constant 0 : index
    %c0_7 = arith.constant 0 : index
    %10 = vector.load %arg4[%c0_6, %c0_7] : memref<32x8xbf16, #tpu.memory_space<vmem>>, vector<32x8xbf16>
    %cst_8 = arith.constant dense<0.000000e+00> : vector<200x8xf32>
    %11 = tpu.matmul %9, %10, %cst_8 {dimension_numbers = #tpu.dot_dimension_numbers<[1], [0], [0], [1], [0, 0, 1, 1], [], []>} : vector<200x32xbf16>, vector<32x8xbf16>, vector<200x8xf32> -> vector<200x8xf32>
    %c0_9 = arith.constant 0 : index
    %c0_10 = arith.constant 0 : index
    %12 = vector.load %arg5[%c0_9, %c0_10] : memref<1x8xf32, #tpu.memory_space<vmem>>, vector<1x8xf32>
    %13 = vector.broadcast %12 : vector<1x8xf32> to vector<200x8xf32>
    %14 = arith.addf %11, %13 : vector<200x8xf32>
    %cst_11 = arith.constant 0.000000e+00 : f32
    %15 = vector.broadcast %cst_11 : f32 to vector<200x8xf32>
    %16 = arith.maximumf %14, %15 : vector<200x8xf32>
    %17 = arith.truncf %16 : vector<200x8xf32> to vector<200x8xbf16>
    %c0_12 = arith.constant 0 : index
    %c0_13 = arith.constant 0 : index
    %18 = vector.load %arg6[%c0_12, %c0_13] : memref<8x8xbf16, #tpu.memory_space<vmem>>, vector<8x8xbf16>
    %cst_14 = arith.constant dense<0.000000e+00> : vector<200x8xf32>
    %19 = tpu.matmul %17, %18, %cst_14 {dimension_numbers = #tpu.dot_dimension_numbers<[1], [0], [0], [1], [0, 0, 1, 1], [], []>} : vector<200x8xbf16>, vector<8x8xbf16>, vector<200x8xf32> -> vector<200x8xf32>
    %c0_15 = arith.constant 0 : index
    %c0_16 = arith.constant 0 : index
    %20 = vector.load %arg7[%c0_15, %c0_16] : memref<1x8xf32, #tpu.memory_space<vmem>>, vector<1x8xf32>
    %21 = vector.broadcast %20 : vector<1x8xf32> to vector<200x8xf32>
    %22 = arith.addf %19, %21 : vector<200x8xf32>
    %23 = arith.negf %22 : vector<200x8xf32>
    %24 = math.exp %23 : vector<200x8xf32>
    %cst_17 = arith.constant 1.000000e+00 : f32
    %25 = vector.broadcast %cst_17 : f32 to vector<200x8xf32>
    %26 = arith.addf %25, %24 : vector<200x8xf32>
    %27 = arith.divf %25, %26 : vector<200x8xf32>
    %c0_18 = arith.constant 0 : index
    %c0_19 = arith.constant 0 : index
    %28 = vector.load %arg8[%c0_18, %c0_19] : memref<200x8xf32, #tpu.memory_space<vmem>>, vector<200x8xf32>
    tpu.vector_store %arg8[%c0_18, %c0_19], %27 {strides = array<i32>} : memref<200x8xf32, #tpu.memory_space<vmem>>, vector<200x8xf32>,
    return
  }
  func.func @transform_0(%arg0: i32) -> (i32, i32) {
    %c0_i32 = arith.constant 0 : i32
    %c0_i32_0 = arith.constant 0 : i32
    return %arg0, %c0_i32 : i32, i32
  }
  func.func @transform_1(%arg0: i32) -> (i32, i32) {
    %c0_i32 = arith.constant 0 : i32
    %c0_i32_0 = arith.constant 0 : i32
    %c0_i32_1 = arith.constant 0 : i32
    return %c0_i32, %c0_i32_0 : i32, i32
  }
  func.func @transform_2(%arg0: i32) -> (i32, i32) {
    %c0_i32 = arith.constant 0 : i32
    %c0_i32_0 = arith.constant 0 : i32
    %c0_i32_1 = arith.constant 0 : i32
    return %c0_i32, %c0_i32_0 : i32, i32
  }
  func.func @transform_3(%arg0: i32) -> (i32, i32) {
    %c0_i32 = arith.constant 0 : i32
    %c0_i32_0 = arith.constant 0 : i32
    %c0_i32_1 = arith.constant 0 : i32
    return %c0_i32, %c0_i32_0 : i32, i32
  }
  func.func @transform_4(%arg0: i32) -> (i32, i32) {
    %c0_i32 = arith.constant 0 : i32
    %c0_i32_0 = arith.constant 0 : i32
    %c0_i32_1 = arith.constant 0 : i32
    return %c0_i32, %c0_i32_0 : i32, i32
  }
  func.func @transform_5(%arg0: i32) -> (i32, i32) {
    %c0_i32 = arith.constant 0 : i32
    %c0_i32_0 = arith.constant 0 : i32
    %c0_i32_1 = arith.constant 0 : i32
    return %c0_i32, %c0_i32_0 : i32, i32
  }
  func.func @transform_6(%arg0: i32) -> (i32, i32) {
    %c0_i32 = arith.constant 0 : i32
    %c0_i32_0 = arith.constant 0 : i32
    %c0_i32_1 = arith.constant 0 : i32
    return %c0_i32, %c0_i32_0 : i32, i32
  }
  func.func @transform_7(%arg0: i32) -> (i32, i32) {
    %c0_i32 = arith.constant 0 : i32
    %c0_i32_0 = arith.constant 0 : i32
    return %arg0, %c0_i32 : i32, i32
  }
}

</mosaic_0001>

<bundles_post_ra>
// kernel: tpu_custom_call.1
= control target key start
LH: loop header
LB: loop body
LE: loop exit
PB: predicated region body
PF: predicated region fallthrough
CT: control target
= control target key end

     0   :  { %v1296_v0 = vmov 0.0   ;;  %vm1297_vm0 = vmmov 0   ;;  %vm88_vm1 = vcmask 261120   ;;  %vm586_vm2 = vcmask 1043456   ;;  %s1769_s1 = inlined_call_operand.vmem [shape: bf16[32,32], index: 1, kind: input, shape index: {}]   ;;  %s1770_s0 = inlined_call_operand.vmem [shape: f32[200,32], index: 0, kind: input, shape index: {}]   ;;  %s1771_s3 = inlined_call_operand.vmem [shape: bf16[32,8], index: 3, kind: input, shape index: {}]   ;;  %s1772_s5 = inlined_call_operand.vmem [shape: bf16[8,8], index: 5, kind: input, shape index: {}]   ;;  %s1773_s2 = inlined_call_operand.vmem [shape: f32[1,32], index: 2, kind: input, shape index: {}]   ;;  %s1774_s4 = inlined_call_operand.vmem [shape: f32[1,8], index: 4, kind: input, shape index: {}]   ;;  %s1775_s6 = inlined_call_operand.vmem [shape: f32[1,8], index: 6, kind: input, shape index: {}]   ;;  %s1776_s7 = inlined_call_operand.vmem [shape: f32[200,8], index: 7, kind: output, shape index: {}]  }
   0x1   :  { %1020 = vmatprep.subr.bf16.mxu0 %v1296_v0  ;;  %v1192_v1 = vld [vmem:[%s1769_s1 + $0x8] sm:$0xff]   ;;  %1024 = vmatprep.mubr.msk.bf16.mxu0 %vm1297_vm0, %v1296_v0  ;;  %v1193_v2 = vld [vmem:[%s1769_s1] sm:$0xff]   ;;  %v41_v6 = vld [vmem:[%s1770_s0 + $0x70] sm:$0xff]  ;;  %vm546_vm3 = vcmask 64512  }
   0x2   :  { %1186 = vmatprep.subr.bf16.mxu1 %v1296_v0  ;;  %1052 = vmatprep.mubr.msk.bf16.mxu1 %vm1297_vm0, %v1296_v0  ;;  %v27_v3 = vld [vmem:[%s1770_s0] sm:$0xff]  ;;  %v28_v4 = vld [vmem:[%s1770_s0 + $0x8] sm:$0xff]  ;;  %v42_v7 = vld [vmem:[%s1770_s0 + $0x78] sm:$0xff] }
   0x3   :  { %1021 = vmatpush3.bf16.msra.mxu0 %v1192_v1  ;;  %1188 = vmatpush3.bf16.msra.mxu1 %v1192_v1  ;;  %v52_v5 = vpack.c.bf16 %v28_v4, %v27_v3  ;;  %v59_v8 = vpack.c.bf16 %v42_v7, %v41_v6  ;;  %v29_v9 = vld [vmem:[%s1770_s0 + $0x10] sm:$0xff]  ;;  %v30_v10 = vld [vmem:[%s1770_s0 + $0x18] sm:$0xff]  ;;  %v43_v11 = vld [vmem:[%s1770_s0 + $0x80] sm:$0xff] }
   0x4   :  { %1022 = vmatprep.subr.bf16.mxu0 %v1296_v0  ;;  %1187 = vmatprep.subr.bf16.mxu1 %v1296_v0  ;;  %v44_v12 = vld [vmem:[%s1770_s0 + $0x88] sm:$0xff]  ;;  %v53_v14 = vpack.c.bf16 %v30_v10, %v29_v9  ;;  %v1195_v15 = vld [vmem:[%s1771_s3] sm:$0xff]   ;;  %v45_v19 = vld [vmem:[%s1770_s0 + $0x90] sm:$0xff] }
   0x5   :  { %v1194_v13 = vld [vmem:[%s1771_s3 + $0x8] sm:$0xff]   ;;  %v60_v16 = vpack.c.bf16 %v44_v12, %v43_v11  ;;  %v31_v17 = vld [vmem:[%s1770_s0 + $0x20] sm:$0xff]  ;;  %v46_v20 = vld [vmem:[%s1770_s0 + $0x98] sm:$0xff] }
   0x6   :  { %v32_v18 = vld [vmem:[%s1770_s0 + $0x28] sm:$0xff]  ;;  %v61_v22 = vpack.c.bf16 %v46_v20, %v45_v19  ;;  %v33_v23 = vld [vmem:[%s1770_s0 + $0x30] sm:$0xff]  ;;  %v34_v24 = vld [vmem:[%s1770_s0 + $0x38] sm:$0xff] }
   0x7   :  { %1023 = vmatpush3.bf16.msra.mxu0 %v1193_v2  ;;  %1189 = vmatpush3.bf16.msra.mxu1 %v1193_v2  ;;  %v54_v21 = vpack.c.bf16 %v32_v18, %v31_v17  ;;  %v47_v25 = vld [vmem:[%s1770_s0 + $0xa0] sm:$0xff]  ;;  %v48_v26 = vld [vmem:[%s1770_s0 + $0xa8] sm:$0xff]  ;;  %v55_v27 = vpack.c.bf16 %v34_v24, %v33_v23  ;;  %v49_v31 = vld [vmem:[%s1770_s0 + $0xb0] sm:$0xff] }
   0x8   :  { %1076 = vmatprep.subr.bf16.mxu1 %v1296_v0  ;;  %1132 = vmatprep.subr.bf16.mxu0 %v1296_v0  ;;  %v62_v28 = vpack.c.bf16 %v48_v26, %v47_v25  ;;  %v35_v29 = vld [vmem:[%s1770_s0 + $0x40] sm:$0xff]  ;;  %v36_v30 = vld [vmem:[%s1770_s0 + $0x48] sm:$0xff]  ;;  %v50_v32 = vld [vmem:[%s1770_s0 + $0xb8] sm:$0xff] }
   0x9   :  { %v56_v33 = vpack.c.bf16 %v36_v30, %v35_v29  ;;  %v63_v34 = vpack.c.bf16 %v50_v32, %v49_v31  ;;  %v37_v35 = vld [vmem:[%s1770_s0 + $0x50] sm:$0xff]  ;;  %v38_v36 = vld [vmem:[%s1770_s0 + $0x58] sm:$0xff]  ;;  %v51_v37 = vld [vmem:[%s1770_s0 + $0xc0] sm:$0xff] }
   0xa   :  { %1025 = vmatmul.mubr.msk.bf16.vlgmr.msra.gmra.mxu0 %vm88_vm1, %v52_v5  ;;  %1053 = vmatmul.mubr.msk.bf16.vlgmr.msra.gmra.mxu1 %vm88_vm1, %v59_v8  ;;  %v57_v38 = vpack.c.bf16 %v38_v36, %v37_v35  ;;  %v64_v39 = vpack.c.bf16 %v51_v37, %v51_v37  ;;  %v39_v40 = vld [vmem:[%s1770_s0 + $0x60] sm:$0xff]  ;;  %v40_v41 = vld [vmem:[%s1770_s0 + $0x68] sm:$0xff] }
   0xb   :  { %1028 = vmatprep.mubr.msk.bf16.mxu0 %vm1297_vm0, %v1296_v0  ;;  %1056 = vmatprep.mubr.msk.bf16.mxu1 %vm1297_vm0, %v1296_v0  ;;  %v58_v42 = vpack.c.bf16 %v40_v41, %v39_v40  ;;  %v538_v43 = vld [vmem:[%s1772_s5] sm:$0xf] }
   0xc   :  { %1077 = vmatpush3.bf16.msra.mxu1 %v1194_v13  ;;  %v588_v44 = vsel %vm586_vm2, %v538_v43, 0  ;;  %v1481_v45 = vld [vmem:[%s1773_s2] ss:$0 sm:$0xff] }
   0xd   :  { %1078 = vmatprep.subr.bf16.mxu1 %v1296_v0  ;;  %1133 = vmatpush3.bf16.msra.mxu0 %v588_v44 }
  0x10   :  { %1079 = vmatpush3.bf16.msra.mxu1 %v1195_v15 }
  0x12   :  { %1029 = vmatmul.mubr.msk.bf16.gmra.mxu0 %vm88_vm1, %v53_v14  ;;  %1057 = vmatmul.mubr.msk.bf16.gmra.mxu1 %vm88_vm1, %v60_v16 }
  0x13   :  { %1032 = vmatprep.mubr.msk.bf16.mxu0 %vm1297_vm0, %v1296_v0  ;;  %1060 = vmatprep.mubr.msk.bf16.mxu1 %vm1297_vm0, %v1296_v0 }
  0x1a   :  { %1033 = vmatmul.mubr.msk.bf16.gmra.mxu0 %vm88_vm1, %v54_v21  ;;  %1061 = vmatmul.mubr.msk.bf16.gmra.mxu1 %vm88_vm1, %v61_v22 }
  0x1b   :  { %1036 = vmatprep.mubr.msk.bf16.mxu0 %vm1297_vm0, %v1296_v0  ;;  %1064 = vmatprep.mubr.msk.bf16.mxu1 %vm1297_vm0, %v1296_v0 }
  0x22   :  { %1037 = vmatmul.mubr.msk.bf16.gmra.mxu0 %vm88_vm1, %v55_v27  ;;  %1065 = vmatmul.mubr.msk.bf16.gmra.mxu1 %vm88_vm1, %v62_v28 }
  0x23   :  { %1040 = vmatprep.mubr.msk.bf16.mxu0 %vm1297_vm0, %v1296_v0  ;;  %1068 = vmatprep.mubr.msk.bf16.mxu1 %vm1297_vm0, %v1296_v0 }
  0x2a   :  { %1041 = vmatmul.mubr.msk.bf16.gmra.mxu0 %vm88_vm1, %v56_v33  ;;  %1069 = vmatmul.mubr.msk.bf16.gmra.mxu1 %vm88_vm1, %v63_v34 }
  0x2b   :  { %1044 = vmatprep.mubr.msk.bf16.mxu0 %vm1297_vm0, %v1296_v0  ;;  %1072 = vmatprep.mubr.msk.bf16.mxu1 %vm1297_vm0, %v1296_v0 }
  0x32   :  { %1045 = vmatmul.mubr.msk.bf16.gmra.mxu0 %vm88_vm1, %v57_v38  ;;  %1073 = vmatmul.mubr.msk.bf16.gmra.mxu1 %vm88_vm1, %v64_v39 }
  0x33   :  { %1048 = vmatprep.mubr.msk.bf16.mxu0 %vm1297_vm0, %v1296_v0  ;;  %1080 = vmatprep.mubr.msk.bf16.mxu1 %vm1297_vm0, %v1296_v0 }
  0x3a   :  { %1049 = vmatmul.mubr.msk.bf16.gmra.mxu0 %vm88_vm1, %v58_v42 }
  0x3b   :  { %1134 = vmatprep.mubr.msk.bf16.mxu0 %vm1297_vm0, %v1296_v0 }
  0xca   :  { %v162_v46 = vpop.f32.mrf.mxu0  ;;  %v1483_v47 = vpop.f32.mrf.mxu1 }
  0xcb   :  { %v163_v49 = vadd.f32 %v1481_v45, %v162_v46 }
  0xcc   :  { %v1026_v48 = vpop.f32.mrf.mxu0  ;;  %v1054_v50 = vpop.f32.mrf.mxu1 }
  0xcd   :  { %v264_v55 = vmax.f32 %v163_v49, 0.0 }
  0xce   :  { %v165_v51 = vpop.f32.mrf.mxu0  ;;  %v1487_v53 = vpop.f32.mrf.mxu1 }
  0xcf   :  { %v166_v52 = vadd.f32 %v1481_v45, %v165_v51 }
  0xd0   :  { %v1027_v54 = vpop.f32.mrf.mxu0  ;;  %v1055_v57 = vpop.f32.mrf.mxu1 }
  0xd1   :  { %v265_v56 = vmax.f32 %v166_v52, 0.0 }
  0xd2   :  { %v170_v58 = vpop.f32.mrf.mxu0  ;;  %v1489_v60 = vpop.f32.mrf.mxu1 }
  0xd3   :  { %v289_v59 = vpack.c.bf16 %v265_v56, %v264_v55  ;;  %v171_v62 = vadd.f32 %v1481_v45, %v170_v58 }
  0xd4   :  { %v1030_v61 = vpop.f32.mrf.mxu0  ;;  %v1058_v63 = vpop.f32.mrf.mxu1 }
  0xd5   :  { %1081 = vmatmul.mubr.msk.bf16.vlgmr.msra.gmra.mxu1 %vm88_vm1, %v289_v59  ;;  %v266_v5 = vmax.f32 %v171_v62, 0.0 }
  0xd6   :  { %v173_v1 = vpop.f32.mrf.mxu0  ;;  %1084 = vmatprep.mubr.msk.bf16.mxu1 %vm1297_vm0, %v1296_v0  ;;  %v1496_v3 = vpop.f32.mrf.mxu1 }
  0xd7   :  { %v174_v2 = vadd.f32 %v1481_v45, %v173_v1 }
  0xd8   :  { %v1031_v4 = vpop.f32.mrf.mxu0  ;;  %v1059_v7 = vpop.f32.mrf.mxu1 }
  0xd9   :  { %v267_v6 = vmax.f32 %v174_v2, 0.0 }
  0xda   :  { %v178_v8 = vpop.f32.mrf.mxu0  ;;  %v1498_v10 = vpop.f32.mrf.mxu1 }
  0xdb   :  { %v290_v9 = vpack.c.bf16 %v267_v6, %v266_v5  ;;  %v179_v12 = vadd.f32 %v1481_v45, %v178_v8 }
  0xdc   :  { %v1034_v11 = vpop.f32.mrf.mxu0  ;;  %v1062_v13 = vpop.f32.mrf.mxu1 }
  0xdd   :  { %1085 = vmatmul.mubr.msk.bf16.gmra.mxu1 %vm88_vm1, %v290_v9  ;;  %v268_v18 = vmax.f32 %v179_v12, 0.0  ;;  %v219_v12 = vadd.f32 %v1481_v45, %v1483_v47 }
  0xde   :  { %v181_v14 = vpop.f32.mrf.mxu0  ;;  %1088 = vmatprep.mubr.msk.bf16.mxu1 %vm1297_vm0, %v1296_v0  ;;  %v1505_v16 = vpop.f32.mrf.mxu1 }
  0xdf   :  { %v182_v15 = vadd.f32 %v1481_v45, %v181_v14  ;;  %v222_v14 = vadd.f32 %v1481_v45, %v1487_v53 }
  0xe0   :  { %v1035_v17 = vpop.f32.mrf.mxu0  ;;  %v1063_v20 = vpop.f32.mrf.mxu1 }
  0xe1   :  { %v269_v19 = vmax.f32 %v182_v15, 0.0  ;;  %v278_v15 = vmax.f32 %v219_v12, 0.0  ;;  %v279_v17 = vmax.f32 %v222_v14, 0.0  ;;  %v230_v20 = vadd.f32 %v1481_v45, %v1496_v3 }
  0xe2   :  { %v186_v21 = vpop.f32.mrf.mxu0  ;;  %v1507_v23 = vpop.f32.mrf.mxu1 }
  0xe3   :  { %v291_v22 = vpack.c.bf16 %v269_v19, %v268_v18  ;;  %v187_v25 = vadd.f32 %v1481_v45, %v186_v21  ;;  %v296_v18 = vpack.c.bf16 %v279_v17, %v278_v15  ;;  %v227_v19 = vadd.f32 %v1481_v45, %v1489_v60 }
  0xe4   :  { %v1038_v24 = vpop.f32.mrf.mxu0  ;;  %v1066_v26 = vpop.f32.mrf.mxu1  ;;  %v281_v53 = vmax.f32 %v230_v20, 0.0 }
  0xe5   :  { %1089 = vmatmul.mubr.msk.bf16.gmra.mxu1 %vm88_vm1, %v291_v22  ;;  %v270_v31 = vmax.f32 %v187_v25, 0.0  ;;  %v280_v47 = vmax.f32 %v227_v19, 0.0  ;;  %v235_v22 = vadd.f32 %v1481_v45, %v1498_v10  ;;  %v238_v24 = vadd.f32 %v1481_v45, %v1505_v16 }
  0xe6   :  { %v189_v27 = vpop.f32.mrf.mxu0  ;;  %1092 = vmatprep.mubr.msk.bf16.mxu1 %vm1297_vm0, %v1296_v0  ;;  %v1514_v29 = vpop.f32.mrf.mxu1  ;;  %v243_v26 = vadd.f32 %v1481_v45, %v1507_v23 }
  0xe7   :  { %v190_v28 = vadd.f32 %v1481_v45, %v189_v27  ;;  %v297_v21 = vpack.c.bf16 %v281_v53, %v280_v47  ;;  %v282_v60 = vmax.f32 %v235_v22, 0.0  ;;  %v283_v3 = vmax.f32 %v238_v24, 0.0 }
  0xe8   :  { %v1039_v30 = vpop.f32.mrf.mxu0  ;;  %v1067_v33 = vpop.f32.mrf.mxu1  ;;  %v246_v27 = vadd.f32 %v1481_v45, %v1514_v29  ;;  %v284_v10 = vmax.f32 %v243_v26, 0.0 }
  0xe9   :  { %v271_v32 = vmax.f32 %v190_v28, 0.0  ;;  %v298_v25 = vpack.c.bf16 %v283_v3, %v282_v60 }
  0xea   :  { %v194_v34 = vpop.f32.mrf.mxu0  ;;  %v1516_v36 = vpop.f32.mrf.mxu1  ;;  %v285_v16 = vmax.f32 %v246_v27, 0.0 }
  0xeb   :  { %v292_v35 = vpack.c.bf16 %v271_v32, %v270_v31  ;;  %v195_v38 = vadd.f32 %v1481_v45, %v194_v34  ;;  %v251_v30 = vadd.f32 %v1481_v45, %v1516_v36  ;;  %v1575_v36 = vld [vmem:[%s1774_s4] ss:$0 sm:$0xff] }
  0xec   :  { %v1042_v37 = vpop.f32.mrf.mxu0  ;;  %v1070_v39 = vpop.f32.mrf.mxu1  ;;  %v299_v28 = vpack.c.bf16 %v285_v16, %v284_v10 }
  0xed   :  { %1093 = vmatmul.mubr.msk.bf16.gmra.mxu1 %vm88_vm1, %v292_v35  ;;  %v272_v44 = vmax.f32 %v195_v38, 0.0  ;;  %v286_v23 = vmax.f32 %v251_v30, 0.0 }
  0xee   :  { %v197_v40 = vpop.f32.mrf.mxu0  ;;  %1096 = vmatprep.mubr.msk.bf16.mxu1 %vm1297_vm0, %v1296_v0  ;;  %v253_v42 = vpop.f32.mrf.mxu1 }
  0xef   :  { %v198_v41 = vadd.f32 %v1481_v45, %v197_v40  ;;  %v254_v31 = vadd.f32 %v1481_v45, %v253_v42 }
  0xf0   :  { %v1043_v43 = vpop.f32.mrf.mxu0  ;;  %v1071_v48 = vpop.f32.mrf.mxu1 }
  0xf1   :  { %v273_v46 = vmax.f32 %v198_v41, 0.0  ;;  %v287_v29 = vmax.f32 %v254_v31, 0.0 }
  0xf2   :  { %v202_v49 = vpop.f32.mrf.mxu0  ;;  %v258_v51 = vpop.f32.mrf.mxu1 }
  0xf3   :  { %v293_v50 = vpack.c.bf16 %v273_v46, %v272_v44  ;;  %v203_v54 = vadd.f32 %v1481_v45, %v202_v49  ;;  %v259_v32 = vadd.f32 %v1481_v45, %v258_v51  ;;  %v300_v33 = vpack.c.bf16 %v287_v29, %v286_v23 }
  0xf4   :  { %v1046_v52 = vpop.f32.mrf.mxu0  ;;  %v1074_v55 = vpop.f32.mrf.mxu1 }
  0xf5   :  { %1097 = vmatmul.mubr.msk.bf16.gmra.mxu1 %vm88_vm1, %v293_v50  ;;  %v274_v61 = vmax.f32 %v203_v54, 0.0  ;;  %v288_v34 = vmax.f32 %v259_v32, 0.0 }
  0xf6   :  { %v205_v56 = vpop.f32.mrf.mxu0  ;;  %1100 = vmatprep.mubr.msk.bf16.mxu1 %vm1297_vm0, %v1296_v0  ;;  %v261_v58 = vpop.f32.mrf.mxu1 }
  0xf7   :  { %v206_v57 = vadd.f32 %v1481_v45, %v205_v56  ;;  %v301_v35 = vpack.c.bf16 %v288_v34, %v288_v34 }
  0xf8   :  { %v1047_v59 = vpop.f32.mrf.mxu0  ;;  %v1075_v63 = vpop.f32.mrf.mxu1 }
  0xf9   :  { %v275_v62 = vmax.f32 %v206_v57, 0.0 }
  0xfa   :  { %v210_v1 = vpop.f32.mrf.mxu0 }
  0xfb   :  { %v294_v2 = vpack.c.bf16 %v275_v62, %v274_v61  ;;  %v211_v5 = vadd.f32 %v1481_v45, %v210_v1 }
  0xfc   :  { %v1050_v4 = vpop.f32.mrf.mxu0 }
  0xfd   :  { %1101 = vmatmul.mubr.msk.bf16.gmra.mxu1 %vm88_vm1, %v294_v2  ;;  %v276_v9 = vmax.f32 %v211_v5, 0.0 }
  0xfe   :  { %v213_v6 = vpop.f32.mrf.mxu0  ;;  %1104 = vmatprep.mubr.msk.bf16.mxu1 %vm1297_vm0, %v1296_v0 }
  0xff   :  { %v214_v7 = vadd.f32 %v1481_v45, %v213_v6 }
 0x100   :  { %v1051_v8 = vpop.f32.mrf.mxu0 }
 0x101   :  { %v277_v11 = vmax.f32 %v214_v7, 0.0 }
 0x103   :  { %v295_v13 = vpack.c.bf16 %v277_v11, %v276_v9 }
 0x105   :  { %1105 = vmatmul.mubr.msk.bf16.gmra.mxu1 %vm88_vm1, %v295_v13 }
 0x106   :  { %1108 = vmatprep.mubr.msk.bf16.mxu1 %vm1297_vm0, %v1296_v0 }
 0x10d   :  { %1109 = vmatmul.mubr.msk.bf16.gmra.mxu1 %vm88_vm1, %v296_v18 }
 0x10e   :  { %1112 = vmatprep.mubr.msk.bf16.mxu1 %vm1297_vm0, %v1296_v0 }
 0x115   :  { %1113 = vmatmul.mubr.msk.bf16.gmra.mxu1 %vm88_vm1, %v297_v21 }
 0x116   :  { %1116 = vmatprep.mubr.msk.bf16.mxu1 %vm1297_vm0, %v1296_v0 }
 0x11d   :  { %1117 = vmatmul.mubr.msk.bf16.gmra.mxu1 %vm88_vm1, %v298_v25 }
 0x11e   :  { %1120 = vmatprep.mubr.msk.bf16.mxu1 %vm1297_vm0, %v1296_v0 }
 0x125   :  { %1121 = vmatmul.mubr.msk.bf16.gmra.mxu1 %vm88_vm1, %v299_v28 }
 0x126   :  { %1124 = vmatprep.mubr.msk.bf16.mxu1 %vm1297_vm0, %v1296_v0 }
 0x12d   :  { %1125 = vmatmul.mubr.msk.bf16.gmra.mxu1 %vm88_vm1, %v300_v33 }
 0x12e   :  { %1128 = vmatprep.mubr.msk.bf16.mxu1 %vm1297_vm0, %v1296_v0 }
 0x135   :  { %1129 = vmatmul.mubr.msk.bf16.gmra.mxu1 %vm88_vm1, %v301_v35 }
 0x195   :  { %v398_v37 = vpop.f32.mrf.mxu1 }
 0x196   :  { %v399_v39 = vadd.f32 %v1575_v36, %v398_v37 }
 0x197   :  { %v1082_v38 = vpop.f32.mrf.mxu1 }
 0x198   :  { %v500_v42 = vmax.f32 %v399_v39, 0.0 }
 0x199   :  { %v401_v45 = vpop.f32.mrf.mxu1 }
 0x19a   :  { %v402_v40 = vadd.f32 %v1575_v36, %v401_v45 }
 0x19b   :  { %v1083_v41 = vpop.f32.mrf.mxu1 }
 0x19c   :  { %v501_v43 = vmax.f32 %v402_v40, 0.0 }
 0x19d   :  { %v406_v44 = vpop.f32.mrf.mxu1 }
 0x19e   :  { %v525_v46 = vpack.c.bf16 %v501_v43, %v500_v42  ;;  %v407_v49 = vadd.f32 %v1575_v36, %v406_v44 }
 0x19f   :  { %v1086_v48 = vpop.f32.mrf.mxu1 }
 0x1a0   :  { %1135 = vmatmul.mubr.msk.bf16.vlgmr.msra.gmra.mxu0 %vm546_vm3, %v525_v46  ;;  %v502_v54 = vmax.f32 %v407_v49, 0.0 }
 0x1a1   :  { %v409_v50 = vpop.f32.mrf.mxu1  ;;  %1138 = vmatprep.mubr.msk.bf16.mxu0 %vm1297_vm0, %v1296_v0 }
 0x1a2   :  { %v410_v51 = vadd.f32 %v1575_v36, %v409_v50 }
 0x1a3   :  { %v1087_v52 = vpop.f32.mrf.mxu1 }
 0x1a4   :  { %v503_v55 = vmax.f32 %v410_v51, 0.0 }
 0x1a5   :  { %v414_v56 = vpop.f32.mrf.mxu1 }
 0x1a6   :  { %v526_v57 = vpack.c.bf16 %v503_v55, %v502_v54  ;;  %v415_v59 = vadd.f32 %v1575_v36, %v414_v56 }
 0x1a7   :  { %v1090_v58 = vpop.f32.mrf.mxu1 }
 0x1a8   :  { %1139 = vmatmul.mubr.msk.bf16.gmra.mxu0 %vm546_vm3, %v526_v57  ;;  %v504_v1 = vmax.f32 %v415_v59, 0.0 }
 0x1a9   :  { %v417_v61 = vpop.f32.mrf.mxu1  ;;  %1142 = vmatprep.mubr.msk.bf16.mxu0 %vm1297_vm0, %v1296_v0 }
 0x1aa   :  { %v418_v62 = vadd.f32 %v1575_v36, %v417_v61 }
 0x1ab   :  { %v1091_v63 = vpop.f32.mrf.mxu1 }
 0x1ac   :  { %v505_v2 = vmax.f32 %v418_v62, 0.0 }
 0x1ad   :  { %v422_v4 = vpop.f32.mrf.mxu1 }
 0x1ae   :  { %v527_v5 = vpack.c.bf16 %v505_v2, %v504_v1  ;;  %v423_v7 = vadd.f32 %v1575_v36, %v422_v4 }
 0x1af   :  { %v1094_v6 = vpop.f32.mrf.mxu1 }
 0x1b0   :  { %1143 = vmatmul.mubr.msk.bf16.gmra.mxu0 %vm546_vm3, %v527_v5  ;;  %v506_v12 = vmax.f32 %v423_v7, 0.0 }
 0x1b1   :  { %v425_v8 = vpop.f32.mrf.mxu1  ;;  %1146 = vmatprep.mubr.msk.bf16.mxu0 %vm1297_vm0, %v1296_v0 }
 0x1b2   :  { %v426_v9 = vadd.f32 %v1575_v36, %v425_v8 }
 0x1b3   :  { %v1095_v11 = vpop.f32.mrf.mxu1 }
 0x1b4   :  { %v507_v13 = vmax.f32 %v426_v9, 0.0 }
 0x1b5   :  { %v430_v14 = vpop.f32.mrf.mxu1 }
 0x1b6   :  { %v528_v15 = vpack.c.bf16 %v507_v13, %v506_v12  ;;  %v431_v18 = vadd.f32 %v1575_v36, %v430_v14 }
 0x1b7   :  { %v1098_v17 = vpop.f32.mrf.mxu1 }
 0x1b8   :  { %1147 = vmatmul.mubr.msk.bf16.gmra.mxu0 %vm546_vm3, %v528_v15  ;;  %v508_v53 = vmax.f32 %v431_v18, 0.0 }
 0x1b9   :  { %v433_v19 = vpop.f32.mrf.mxu1  ;;  %1150 = vmatprep.mubr.msk.bf16.mxu0 %vm1297_vm0, %v1296_v0 }
 0x1ba   :  { %v434_v20 = vadd.f32 %v1575_v36, %v433_v19 }
 0x1bb   :  { %v1099_v47 = vpop.f32.mrf.mxu1 }
 0x1bc   :  { %v509_v21 = vmax.f32 %v434_v20, 0.0 }
 0x1bd   :  { %v438_v22 = vpop.f32.mrf.mxu1 }
 0x1be   :  { %v529_v24 = vpack.c.bf16 %v509_v21, %v508_v53  ;;  %v439_v3 = vadd.f32 %v1575_v36, %v438_v22 }
 0x1bf   :  { %v1102_v60 = vpop.f32.mrf.mxu1 }
 0x1c0   :  { %1151 = vmatmul.mubr.msk.bf16.gmra.mxu0 %vm546_vm3, %v529_v24  ;;  %v510_v10 = vmax.f32 %v439_v3, 0.0 }
 0x1c1   :  { %v441_v25 = vpop.f32.mrf.mxu1  ;;  %1154 = vmatprep.mubr.msk.bf16.mxu0 %vm1297_vm0, %v1296_v0 }
 0x1c2   :  { %v442_v26 = vadd.f32 %v1575_v36, %v441_v25 }
 0x1c3   :  { %v1103_v27 = vpop.f32.mrf.mxu1 }
 0x1c4   :  { %v511_v16 = vmax.f32 %v442_v26, 0.0 }
 0x1c5   :  { %v446_v28 = vpop.f32.mrf.mxu1 }
 0x1c6   :  { %v530_v30 = vpack.c.bf16 %v511_v16, %v510_v10  ;;  %v447_v23 = vadd.f32 %v1575_v36, %v446_v28  ;;  %v1642_v28 = vld [vmem:[%s1775_s6] ss:$0 sm:$0xff] }
 0x1c7   :  { %v1106_v31 = vpop.f32.mrf.mxu1 }
 0x1c8   :  { %1155 = vmatmul.mubr.msk.bf16.gmra.mxu0 %vm546_vm3, %v530_v30  ;;  %v512_v34 = vmax.f32 %v447_v23, 0.0 }
 0x1c9   :  { %v449_v29 = vpop.f32.mrf.mxu1  ;;  %1158 = vmatprep.mubr.msk.bf16.mxu0 %vm1297_vm0, %v1296_v0 }
 0x1ca   :  { %v450_v32 = vadd.f32 %v1575_v36, %v449_v29 }
 0x1cb   :  { %v1107_v33 = vpop.f32.mrf.mxu1 }
 0x1cc   :  { %v513_v35 = vmax.f32 %v450_v32, 0.0 }
 0x1cd   :  { %v454_v37 = vpop.f32.mrf.mxu1 }
 0x1ce   :  { %v531_v38 = vpack.c.bf16 %v513_v35, %v512_v34  ;;  %v455_v45 = vadd.f32 %v1575_v36, %v454_v37 }
 0x1cf   :  { %v1110_v39 = vpop.f32.mrf.mxu1 }
 0x1d0   :  { %1159 = vmatmul.mubr.msk.bf16.gmra.mxu0 %vm546_vm3, %v531_v38  ;;  %v514_v43 = vmax.f32 %v455_v45, 0.0 }
 0x1d1   :  { %v457_v40 = vpop.f32.mrf.mxu1  ;;  %1162 = vmatprep.mubr.msk.bf16.mxu0 %vm1297_vm0, %v1296_v0 }
 0x1d2   :  { %v458_v41 = vadd.f32 %v1575_v36, %v457_v40 }
 0x1d3   :  { %v1111_v42 = vpop.f32.mrf.mxu1 }
 0x1d4   :  { %v515_v44 = vmax.f32 %v458_v41, 0.0 }
 0x1d5   :  { %v462_v46 = vpop.f32.mrf.mxu1 }
 0x1d6   :  { %v532_v48 = vpack.c.bf16 %v515_v44, %v514_v43  ;;  %v463_v50 = vadd.f32 %v1575_v36, %v462_v46 }
 0x1d7   :  { %v1114_v49 = vpop.f32.mrf.mxu1 }
 0x1d8   :  { %1163 = vmatmul.mubr.msk.bf16.gmra.mxu0 %vm546_vm3, %v532_v48  ;;  %v516_v55 = vmax.f32 %v463_v50, 0.0 }
 0x1d9   :  { %v465_v51 = vpop.f32.mrf.mxu1  ;;  %1166 = vmatprep.mubr.msk.bf16.mxu0 %vm1297_vm0, %v1296_v0 }
 0x1da   :  { %v466_v52 = vadd.f32 %v1575_v36, %v465_v51 }
 0x1db   :  { %v1115_v54 = vpop.f32.mrf.mxu1 }
 0x1dc   :  { %v517_v56 = vmax.f32 %v466_v52, 0.0 }
 0x1dd   :  { %v470_v57 = vpop.f32.mrf.mxu1 }
 0x1de   :  { %v533_v58 = vpack.c.bf16 %v517_v56, %v516_v55  ;;  %v471_v61 = vadd.f32 %v1575_v36, %v470_v57 }
 0x1df   :  { %v1118_v59 = vpop.f32.mrf.mxu1 }
 0x1e0   :  { %1167 = vmatmul.mubr.msk.bf16.gmra.mxu0 %vm546_vm3, %v533_v58  ;;  %v518_v2 = vmax.f32 %v471_v61, 0.0 }
 0x1e1   :  { %v473_v62 = vpop.f32.mrf.mxu1  ;;  %1170 = vmatprep.mubr.msk.bf16.mxu0 %vm1297_vm0, %v1296_v0 }
 0x1e2   :  { %v474_v63 = vadd.f32 %v1575_v36, %v473_v62 }
 0x1e3   :  { %v1119_v1 = vpop.f32.mrf.mxu1 }
 0x1e4   :  { %v519_v4 = vmax.f32 %v474_v63, 0.0 }
 0x1e5   :  { %v478_v5 = vpop.f32.mrf.mxu1 }
 0x1e6   :  { %v534_v6 = vpack.c.bf16 %v519_v4, %v518_v2  ;;  %v479_v8 = vadd.f32 %v1575_v36, %v478_v5 }
 0x1e7   :  { %v1122_v7 = vpop.f32.mrf.mxu1 }
 0x1e8   :  { %1171 = vmatmul.mubr.msk.bf16.gmra.mxu0 %vm546_vm3, %v534_v6  ;;  %v520_v13 = vmax.f32 %v479_v8, 0.0 }
 0x1e9   :  { %v481_v9 = vpop.f32.mrf.mxu1  ;;  %1174 = vmatprep.mubr.msk.bf16.mxu0 %vm1297_vm0, %v1296_v0 }
 0x1ea   :  { %v482_v11 = vadd.f32 %v1575_v36, %v481_v9 }
 0x1eb   :  { %v1123_v12 = vpop.f32.mrf.mxu1 }
 0x1ec   :  { %v521_v14 = vmax.f32 %v482_v11, 0.0 }
 0x1ed   :  { %v486_v15 = vpop.f32.mrf.mxu1 }
 0x1ee   :  { %v535_v17 = vpack.c.bf16 %v521_v14, %v520_v13  ;;  %v487_v19 = vadd.f32 %v1575_v36, %v486_v15 }
 0x1ef   :  { %v1126_v18 = vpop.f32.mrf.mxu1 }
 0x1f0   :  { %1175 = vmatmul.mubr.msk.bf16.gmra.mxu0 %vm546_vm3, %v535_v17  ;;  %v522_v21 = vmax.f32 %v487_v19, 0.0 }
 0x1f1   :  { %v489_v20 = vpop.f32.mrf.mxu1  ;;  %1178 = vmatprep.mubr.msk.bf16.mxu0 %vm1297_vm0, %v1296_v0 }
 0x1f2   :  { %v490_v47 = vadd.f32 %v1575_v36, %v489_v20 }
 0x1f3   :  { %v1127_v53 = vpop.f32.mrf.mxu1 }
 0x1f4   :  { %v523_v22 = vmax.f32 %v490_v47, 0.0 }
 0x1f5   :  { %v494_v24 = vpop.f32.mrf.mxu1 }
 0x1f6   :  { %v536_v60 = vpack.c.bf16 %v523_v22, %v522_v21  ;;  %v495_v3 = vadd.f32 %v1575_v36, %v494_v24 }
 0x1f7   :  { %v1130_v25 = vpop.f32.mrf.mxu1 }
 0x1f8   :  { %v524_v26 = vmax.f32 %v495_v3, 0.0  ;;  %1179 = vmatmul.mubr.msk.bf16.gmra.mxu0 %vm546_vm3, %v536_v60 }
 0x1f9   :  { %v497_v27 = vpop.f32.mrf.mxu1  ;;  %1182 = vmatprep.mubr.msk.bf16.mxu0 %vm1297_vm0, %v1296_v0 }
 0x1fa   :  { %v537_v16 = vpack.c.bf16 %v524_v26, %v524_v26 }
 0x1fb   :  { %v1131_v10 = vpop.f32.mrf.mxu1 }
 0x200   :  { %1183 = vmatmul.mubr.msk.bf16.gmra.mxu0 %vm546_vm3, %v537_v16 }
 0x260   :  { %v624_v30 = vpop.f32.mrf.mxu0 }
 0x261   :  { %v625_v36 = vadd.f32 %v1642_v28, %v624_v30 }
 0x262   :  { %v1136_v31 = vpop.f32.mrf.mxu0 }
 0x263   :  { %v951_v23 = vmul.f32 -1.442695, %v625_v36 }
 0x264   :  { %v627_v29 = vpop.f32.mrf.mxu0 }
 0x265   :  { %1196 = vpow2.f32 %v951_v23  ;;  %v628_v32 = vadd.f32 %v1642_v28, %v627_v29 }
 0x266   :  { %v1137_v33 = vpop.f32.mrf.mxu0 }
 0x267   :  { %v952_v0 = vmul.f32 -1.442695, %v628_v32 }
 0x268   :  { %v632_v34 = vpop.f32.mrf.mxu0 }
 0x269   :  { %1198 = vpow2.f32 %v952_v0  ;;  %v633_v35 = vadd.f32 %v1642_v28, %v632_v34 }
 0x26a   :  { %v1140_v37 = vpop.f32.mrf.mxu0 }
 0x26b   :  { %v953_v38 = vmul.f32 -1.442695, %v633_v35 }
 0x26c   :  { %v635_v39 = vpop.f32.mrf.mxu0 }
 0x26d   :  { %1200 = vpow2.f32 %v953_v38  ;;  %v636_v45 = vadd.f32 %v1642_v28, %v635_v39 }
 0x26e   :  { %v1141_v40 = vpop.f32.mrf.mxu0 }
 0x26f   :  { %v954_v41 = vmul.f32 -1.442695, %v636_v45 }
 0x270   :  { %v640_v42 = vpop.f32.mrf.mxu0 }
 0x271   :  { %1202 = vpow2.f32 %v954_v41  ;;  %v641_v43 = vadd.f32 %v1642_v28, %v640_v42 }
 0x272   :  { %v1197_v44 = vpop.eup %1196  ;;  %v1144_v46 = vpop.f32.mrf.mxu0 }
 0x273   :  { %v801_v48 = vadd.f32 1.0, %v1197_v44  ;;  %v955_v49 = vmul.f32 -1.442695, %v641_v43 }
 0x274   :  { %v643_v50 = vpop.f32.mrf.mxu0 }
 0x275   :  { %1204 = vrcp.f32 %v801_v48  ;;  %v644_v51 = vadd.f32 %v1642_v28, %v643_v50 }
 0x276   :  { %v1199_v52 = vpop.eup %1198  ;;  %1206 = vpow2.f32 %v955_v49  ;;  %v1145_v54 = vpop.f32.mrf.mxu0 }
 0x277   :  { %v802_v55 = vadd.f32 1.0, %v1199_v52  ;;  %v956_v56 = vmul.f32 -1.442695, %v644_v51 }
 0x278   :  { %v648_v57 = vpop.f32.mrf.mxu0 }
 0x279   :  { %1208 = vrcp.f32 %v802_v55  ;;  %v649_v58 = vadd.f32 %v1642_v28, %v648_v57 }
 0x27a   :  { %v1201_v59 = vpop.eup %1200  ;;  %1210 = vpow2.f32 %v956_v56  ;;  %v1148_v61 = vpop.f32.mrf.mxu0 }
 0x27b   :  { %v803_v62 = vadd.f32 1.0, %v1201_v59  ;;  %v957_v63 = vmul.f32 -1.442695, %v649_v58 }
 0x27c   :  { %v651_v1 = vpop.f32.mrf.mxu0 }
 0x27d   :  { %1212 = vrcp.f32 %v803_v62  ;;  %v652_v2 = vadd.f32 %v1642_v28, %v651_v1 }
 0x27e   :  { %v1203_v4 = vpop.eup %1202  ;;  %1214 = vpow2.f32 %v957_v63  ;;  %v1149_v5 = vpop.f32.mrf.mxu0 }
 0x27f   :  { %v804_v6 = vadd.f32 1.0, %v1203_v4  ;;  %v958_v7 = vmul.f32 -1.442695, %v652_v2 }
 0x280   :  { %v656_v8 = vpop.f32.mrf.mxu0 }
 0x281   :  { %1216 = vrcp.f32 %v804_v6  ;;  %v657_v9 = vadd.f32 %v1642_v28, %v656_v8 }
 0x282   :  { %v1205_v11 = vpop.eup %1204  ;;  %1218 = vpow2.f32 %v958_v7  ;;  %v1152_v12 = vpop.f32.mrf.mxu0 }
 0x283   :  { %v1207_v13 = vpop.eup %1206  ;;  %876 = vst.msk [vmem:[%s1776_s7] sm:$0xff] %vm546_vm3, %v1205_v11  ;;  %v959_v14 = vmul.f32 -1.442695, %v657_v9 }
 0x284   :  { %v805_v15 = vadd.f32 1.0, %v1207_v13  ;;  %v659_v17 = vpop.f32.mrf.mxu0 }
 0x285   :  { %1220 = vpow2.f32 %v959_v14  ;;  %v660_v18 = vadd.f32 %v1642_v28, %v659_v17 }
 0x286   :  { %v1209_v19 = vpop.eup %1208  ;;  %1222 = vrcp.f32 %v805_v15  ;;  %v1153_v20 = vpop.f32.mrf.mxu0 }
 0x287   :  { %v1211_v47 = vpop.eup %1210  ;;  %877 = vst.msk [vmem:[%s1776_s7 + $0x8] sm:$0xff] %vm546_vm3, %v1209_v19  ;;  %v960_v53 = vmul.f32 -1.442695, %v660_v18 }
 0x288   :  { %v806_v21 = vadd.f32 1.0, %v1211_v47  ;;  %v664_v22 = vpop.f32.mrf.mxu0 }
 0x289   :  { %1224 = vpow2.f32 %v960_v53  ;;  %v665_v24 = vadd.f32 %v1642_v28, %v664_v22 }
 0x28a   :  { %v1213_v60 = vpop.eup %1212  ;;  %1226 = vrcp.f32 %v806_v21  ;;  %v1156_v3 = vpop.f32.mrf.mxu0 }
 0x28b   :  { %v1215_v25 = vpop.eup %1214  ;;  %878 = vst.msk [vmem:[%s1776_s7 + $0x10] sm:$0xff] %vm546_vm3, %v1213_v60  ;;  %v961_v26 = vmul.f32 -1.442695, %v665_v24 }
 0x28c   :  { %v807_v27 = vadd.f32 1.0, %v1215_v25  ;;  %v667_v10 = vpop.f32.mrf.mxu0 }
 0x28d   :  { %1228 = vpow2.f32 %v961_v26  ;;  %v668_v16 = vadd.f32 %v1642_v28, %v667_v10 }
 0x28e   :  { %v1217_v30 = vpop.eup %1216  ;;  %1230 = vrcp.f32 %v807_v27  ;;  %v1157_v36 = vpop.f32.mrf.mxu0 }
 0x28f   :  { %v1219_v31 = vpop.eup %1218  ;;  %879 = vst.msk [vmem:[%s1776_s7 + $0x18] sm:$0xff] %vm546_vm3, %v1217_v30  ;;  %v962_v23 = vmul.f32 -1.442695, %v668_v16 }
 0x290   :  { %v808_v29 = vadd.f32 1.0, %v1219_v31  ;;  %v672_v32 = vpop.f32.mrf.mxu0 }
 0x291   :  { %1232 = vpow2.f32 %v962_v23  ;;  %v673_v33 = vadd.f32 %v1642_v28, %v672_v32 }
 0x292   :  { %v1221_v0 = vpop.eup %1220  ;;  %1234 = vrcp.f32 %v808_v29  ;;  %v1160_v34 = vpop.f32.mrf.mxu0 }
 0x293   :  { %v1223_v35 = vpop.eup %1222  ;;  %v809_v37 = vadd.f32 1.0, %v1221_v0  ;;  %v963_v38 = vmul.f32 -1.442695, %v673_v33 }
 0x294   :  { %880 = vst.msk [vmem:[%s1776_s7 + $0x20] sm:$0xff] %vm546_vm3, %v1223_v35  ;;  %v675_v39 = vpop.f32.mrf.mxu0 }
 0x295   :  { %1236 = vrcp.f32 %v809_v37  ;;  %v676_v45 = vadd.f32 %v1642_v28, %v675_v39 }
 0x296   :  { %v1225_v40 = vpop.eup %1224  ;;  %1238 = vpow2.f32 %v963_v38  ;;  %v1161_v41 = vpop.f32.mrf.mxu0 }
 0x297   :  { %v1227_v42 = vpop.eup %1226  ;;  %v810_v43 = vadd.f32 1.0, %v1225_v40  ;;  %v964_v44 = vmul.f32 -1.442695, %v676_v45 }
 0x298   :  { %881 = vst.msk [vmem:[%s1776_s7 + $0x28] sm:$0xff] %vm546_vm3, %v1227_v42  ;;  %v680_v46 = vpop.f32.mrf.mxu0 }
 0x299   :  { %1240 = vrcp.f32 %v810_v43  ;;  %v681_v48 = vadd.f32 %v1642_v28, %v680_v46 }
 0x29a   :  { %v1229_v49 = vpop.eup %1228  ;;  %1242 = vpow2.f32 %v964_v44  ;;  %v1164_v50 = vpop.f32.mrf.mxu0 }
 0x29b   :  { %v1231_v51 = vpop.eup %1230  ;;  %v811_v52 = vadd.f32 1.0, %v1229_v49  ;;  %v965_v54 = vmul.f32 -1.442695, %v681_v48 }
 0x29c   :  { %882 = vst.msk [vmem:[%s1776_s7 + $0x30] sm:$0xff] %vm546_vm3, %v1231_v51  ;;  %v683_v55 = vpop.f32.mrf.mxu0 }
 0x29d   :  { %1244 = vrcp.f32 %v811_v52  ;;  %v684_v56 = vadd.f32 %v1642_v28, %v683_v55 }
 0x29e   :  { %v1233_v57 = vpop.eup %1232  ;;  %1246 = vpow2.f32 %v965_v54  ;;  %v1165_v58 = vpop.f32.mrf.mxu0 }
 0x29f   :  { %v1235_v59 = vpop.eup %1234  ;;  %v812_v61 = vadd.f32 1.0, %v1233_v57  ;;  %v966_v62 = vmul.f32 -1.442695, %v684_v56 }
 0x2a0   :  { %883 = vst.msk [vmem:[%s1776_s7 + $0x38] sm:$0xff] %vm546_vm3, %v1235_v59  ;;  %v688_v63 = vpop.f32.mrf.mxu0 }
 0x2a1   :  { %1248 = vrcp.f32 %v812_v61  ;;  %v689_v1 = vadd.f32 %v1642_v28, %v688_v63 }
 0x2a2   :  { %v1237_v2 = vpop.eup %1236  ;;  %1250 = vpow2.f32 %v966_v62  ;;  %v1168_v4 = vpop.f32.mrf.mxu0 }
 0x2a3   :  { %v1239_v5 = vpop.eup %1238  ;;  %884 = vst.msk [vmem:[%s1776_s7 + $0x40] sm:$0xff] %vm546_vm3, %v1237_v2  ;;  %v967_v6 = vmul.f32 -1.442695, %v689_v1 }
 0x2a4   :  { %v813_v7 = vadd.f32 1.0, %v1239_v5  ;;  %v691_v8 = vpop.f32.mrf.mxu0 }
 0x2a5   :  { %1252 = vpow2.f32 %v967_v6  ;;  %v692_v9 = vadd.f32 %v1642_v28, %v691_v8 }
 0x2a6   :  { %v1241_v11 = vpop.eup %1240  ;;  %1254 = vrcp.f32 %v813_v7  ;;  %v1169_v12 = vpop.f32.mrf.mxu0 }
 0x2a7   :  { %v1243_v13 = vpop.eup %1242  ;;  %885 = vst.msk [vmem:[%s1776_s7 + $0x48] sm:$0xff] %vm546_vm3, %v1241_v11  ;;  %v968_v14 = vmul.f32 -1.442695, %v692_v9 }
 0x2a8   :  { %v814_v15 = vadd.f32 1.0, %v1243_v13  ;;  %v696_v17 = vpop.f32.mrf.mxu0 }
 0x2a9   :  { %1256 = vpow2.f32 %v968_v14  ;;  %v697_v18 = vadd.f32 %v1642_v28, %v696_v17 }
 0x2aa   :  { %v1245_v19 = vpop.eup %1244  ;;  %1258 = vrcp.f32 %v814_v15  ;;  %v1172_v20 = vpop.f32.mrf.mxu0 }
 0x2ab   :  { %v1247_v47 = vpop.eup %1246  ;;  %886 = vst.msk [vmem:[%s1776_s7 + $0x50] sm:$0xff] %vm546_vm3, %v1245_v19  ;;  %v969_v53 = vmul.f32 -1.442695, %v697_v18 }
 0x2ac   :  { %v815_v21 = vadd.f32 1.0, %v1247_v47  ;;  %v699_v22 = vpop.f32.mrf.mxu0 }
 0x2ad   :  { %1260 = vpow2.f32 %v969_v53  ;;  %v700_v24 = vadd.f32 %v1642_v28, %v699_v22 }
 0x2ae   :  { %v1249_v60 = vpop.eup %1248  ;;  %1262 = vrcp.f32 %v815_v21  ;;  %v1173_v3 = vpop.f32.mrf.mxu0 }
 0x2af   :  { %v1251_v25 = vpop.eup %1250  ;;  %887 = vst.msk [vmem:[%s1776_s7 + $0x58] sm:$0xff] %vm546_vm3, %v1249_v60  ;;  %v970_v26 = vmul.f32 -1.442695, %v700_v24 }
 0x2b0   :  { %v816_v27 = vadd.f32 1.0, %v1251_v25  ;;  %v704_v10 = vpop.f32.mrf.mxu0 }
 0x2b1   :  { %1264 = vpow2.f32 %v970_v26  ;;  %v705_v16 = vadd.f32 %v1642_v28, %v704_v10 }
 0x2b2   :  { %v1253_v30 = vpop.eup %1252  ;;  %1266 = vrcp.f32 %v816_v27  ;;  %v1176_v36 = vpop.f32.mrf.mxu0 }
 0x2b3   :  { %v1255_v31 = vpop.eup %1254  ;;  %v817_v23 = vadd.f32 1.0, %v1253_v30  ;;  %v971_v29 = vmul.f32 -1.442695, %v705_v16 }
 0x2b4   :  { %888 = vst.msk [vmem:[%s1776_s7 + $0x60] sm:$0xff] %vm546_vm3, %v1255_v31  ;;  %v707_v32 = vpop.f32.mrf.mxu0 }
 0x2b5   :  { %1268 = vrcp.f32 %v817_v23  ;;  %v708_v33 = vadd.f32 %v1642_v28, %v707_v32 }
 0x2b6   :  { %v1257_v0 = vpop.eup %1256  ;;  %1270 = vpow2.f32 %v971_v29  ;;  %v1177_v34 = vpop.f32.mrf.mxu0 }
 0x2b7   :  { %v1259_v35 = vpop.eup %1258  ;;  %v818_v37 = vadd.f32 1.0, %v1257_v0  ;;  %v972_v38 = vmul.f32 -1.442695, %v708_v33 }
 0x2b8   :  { %889 = vst.msk [vmem:[%s1776_s7 + $0x68] sm:$0xff] %vm546_vm3, %v1259_v35  ;;  %v712_v39 = vpop.f32.mrf.mxu0 }
 0x2b9   :  { %1272 = vrcp.f32 %v818_v37  ;;  %v713_v45 = vadd.f32 %v1642_v28, %v712_v39 }
 0x2ba   :  { %v1261_v40 = vpop.eup %1260  ;;  %1274 = vpow2.f32 %v972_v38  ;;  %v1180_v41 = vpop.f32.mrf.mxu0 }
 0x2bb   :  { %v1263_v42 = vpop.eup %1262  ;;  %v819_v43 = vadd.f32 1.0, %v1261_v40  ;;  %v973_v44 = vmul.f32 -1.442695, %v713_v45 }
 0x2bc   :  { %890 = vst.msk [vmem:[%s1776_s7 + $0x70] sm:$0xff] %vm546_vm3, %v1263_v42  ;;  %v715_v46 = vpop.f32.mrf.mxu0 }
 0x2bd   :  { %1276 = vrcp.f32 %v819_v43  ;;  %v716_v48 = vadd.f32 %v1642_v28, %v715_v46 }
 0x2be   :  { %v1265_v49 = vpop.eup %1264  ;;  %1278 = vpow2.f32 %v973_v44  ;;  %v1181_v50 = vpop.f32.mrf.mxu0 }
 0x2bf   :  { %v1267_v51 = vpop.eup %1266  ;;  %v820_v52 = vadd.f32 1.0, %v1265_v49  ;;  %v974_v54 = vmul.f32 -1.442695, %v716_v48 }
 0x2c0   :  { %891 = vst.msk [vmem:[%s1776_s7 + $0x78] sm:$0xff] %vm546_vm3, %v1267_v51  ;;  %v720_v55 = vpop.f32.mrf.mxu0 }
 0x2c1   :  { %1280 = vrcp.f32 %v820_v52  ;;  %v721_v56 = vadd.f32 %v1642_v28, %v720_v55 }
 0x2c2   :  { %v1269_v57 = vpop.eup %1268  ;;  %1282 = vpow2.f32 %v974_v54  ;;  %v1184_v58 = vpop.f32.mrf.mxu0 }
 0x2c3   :  { %v1271_v59 = vpop.eup %1270  ;;  %892 = vst.msk [vmem:[%s1776_s7 + $0x80] sm:$0xff] %vm546_vm3, %v1269_v57  ;;  %v975_v61 = vmul.f32 -1.442695, %v721_v56 }
 0x2c4   :  { %v821_v62 = vadd.f32 1.0, %v1271_v59  ;;  %v723_v63 = vpop.f32.mrf.mxu0 }
 0x2c5   :  { %1284 = vpow2.f32 %v975_v61 }
 0x2c6   :  { %v1273_v1 = vpop.eup %1272  ;;  %1286 = vrcp.f32 %v821_v62  ;;  %v1185_v2 = vpop.f32.mrf.mxu0 }
 0x2c7   :  { %v1275_v4 = vpop.eup %1274  ;;  %893 = vst.msk [vmem:[%s1776_s7 + $0x88] sm:$0xff] %vm546_vm3, %v1273_v1 }
 0x2c8   :  { %v822_v28 = vadd.f32 1.0, %v1275_v4 }
 0x2ca   :  { %v1277_v5 = vpop.eup %1276  ;;  %1288 = vrcp.f32 %v822_v28 }
 0x2cb   :  { %v1279_v6 = vpop.eup %1278  ;;  %894 = vst.msk [vmem:[%s1776_s7 + $0x90] sm:$0xff] %vm546_vm3, %v1277_v5 }
 0x2cc   :  { %v823_v7 = vadd.f32 1.0, %v1279_v6 }
 0x2ce   :  { %v1281_v8 = vpop.eup %1280  ;;  %1290 = vrcp.f32 %v823_v7 }
 0x2cf   :  { %v1283_v9 = vpop.eup %1282  ;;  %895 = vst.msk [vmem:[%s1776_s7 + $0x98] sm:$0xff] %vm546_vm3, %v1281_v8 }
 0x2d0   :  { %v824_v11 = vadd.f32 1.0, %v1283_v9 }
 0x2d2   :  { %v1285_v12 = vpop.eup %1284  ;;  %1292 = vrcp.f32 %v824_v11 }
 0x2d3   :  { %v1287_v13 = vpop.eup %1286  ;;  %v825_v14 = vadd.f32 1.0, %v1285_v12 }
 0x2d4   :  { %896 = vst.msk [vmem:[%s1776_s7 + $0xa0] sm:$0xff] %vm546_vm3, %v1287_v13 }
 0x2d5   :  { %1294 = vrcp.f32 %v825_v14 }
 0x2d7   :  { %v1289_v15 = vpop.eup %1288 }
 0x2d8   :  { %897 = vst.msk [vmem:[%s1776_s7 + $0xa8] sm:$0xff] %vm546_vm3, %v1289_v15 }
 0x2db   :  { %v1291_v17 = vpop.eup %1290 }
 0x2dc   :  { %898 = vst.msk [vmem:[%s1776_s7 + $0xb0] sm:$0xff] %vm546_vm3, %v1291_v17 }
 0x2df   :  { %v1293_v18 = vpop.eup %1292 }
 0x2e0   :  { %899 = vst.msk [vmem:[%s1776_s7 + $0xb8] sm:$0xff] %vm546_vm3, %v1293_v18 }
 0x2e2   :  { %v1295_v19 = vpop.eup %1294 }
 0x2e3   :  { %900 = vst.msk [vmem:[%s1776_s7 + $0xc0] sm:$0xff] %vm546_vm3, %v1295_v19 }

</bundles_post_ra>
